<compile_context>
chip_gen: v7x
topology: tpu7x:2x2x1
jax: 0.10.0
libtpu: 0.0.40
codegen_flags: <defaults>
</compile_context>

<pallas_src>
import math

import numpy as np

import jax
import jax.numpy as jnp
from jax.experimental import pallas as pl
from jax.experimental.pallas import tpu as pltpu

_LANE = 128
_SUB = 8


def _round_up(x, m):
    return ((x + m - 1) // m) * m


def _cdiv(a, b):
    return -(-a // b)


def _itemsize(dt):
    return np.dtype(dt).itemsize


def _tpu_vmem_budget():
    """(tile-sizing budget, scoped-vmem limit) in bytes, per TPU generation."""
    try:
        cap = int(pltpu.get_tpu_info().vmem_capacity_bytes)
    except Exception:
        cap = 64 << 20                       # conservative fallback: v7x physical
    budget = min(int(cap * 0.40), 56 << 20)  # ~51 MiB on v5e/v6e, ~25 MiB on v7x
    limit = min(int(cap * 0.70), 100 << 20)
    return budget, max(limit, budget + (8 << 20))


def _pick_dense_tiles(b8, in_size, out_p, in_bytes, out_bytes, block_batch, budget):
    """Choose (tb, tn); everything counted with default 2x double-buffering."""
    def wt_cost(tn):
        # double-buffered W^T slab + (sublane-padded) bias tile
        return 2 * in_size * tn * in_bytes + 2 * _SUB * tn * 4

    tn = out_p
    while tn > _LANE and wt_cost(tn) > budget // 2:
        tn = max(_LANE, _round_up(tn // 2, _LANE))   # N-tile when weights don't fit

    avail = max(budget - wt_cost(tn), 0)
    per_row = 2 * (in_size * in_bytes + tn * out_bytes)      # d row + out row, 2x buffered
    tb = min(int(block_batch), avail // max(per_row, 1))
    tb = max(_SUB, (tb // _SUB) * _SUB)
    tb = min(tb, b8)
    if b8 >= 2 * _SUB:
        # guarantee >= 2 batch grid steps so the "parallel" axis can split
        # across v7x's two TensorCores (harmless on single-TC v5e/v6e).
        tb = min(tb, _round_up(_cdiv(b8, 2), _SUB))
    return max(tb, _SUB), int(tn)


def _pick_diag_tile(b8, n, in_bytes, out_bytes, block_batch, budget):
    resident = 2 * 2 * _SUB * n * 4                          # diag(W) + bias, 2x buffered
    per_row = 2 * n * (in_bytes + out_bytes)
    tb = min(int(block_batch), max(budget - resident, 0) // max(per_row, 1))
    tb = max(_SUB, (tb // _SUB) * _SUB)
    tb = min(tb, b8)
    if b8 >= 2 * _SUB:
        tb = min(tb, _round_up(_cdiv(b8, 2), _SUB))
    return max(tb, _SUB)


# ----------------------------- kernels ---------------------------------------

def _td_matmul_kernel(d_ref, wt_ref, b_ref, o_ref):
    # (tb, K) @ (K, tn) on the MXU with f32 accumulation; relu on VPU, exp on EUP.
    x = jnp.dot(d_ref[...], wt_ref[...], preferred_element_type=jnp.float32)
    x = x + b_ref[...].astype(jnp.float32)          # (tb, tn) + (1, tn) broadcast
    o_ref[...] = jnp.exp(-jnp.maximum(x, 0.0)).astype(o_ref.dtype)


def _td_diag_kernel(d_ref, wd_ref, b_ref, o_ref):
    # diag=True: elementwise d * diag(W) + b; no MXU, no dense W*eye.
    x = (d_ref[...].astype(jnp.float32) * wd_ref[...].astype(jnp.float32)
         + b_ref[...].astype(jnp.float32))
    o_ref[...] = jnp.exp(-jnp.maximum(x, 0.0)).astype(o_ref.dtype)


# ----------------------------- wrapper ----------------------------------------

def temporal_decay(d, W, b, diag=False, *, block_batch=512,
                   matmul_dtype=jnp.bfloat16):
    """gamma = exp(-relu(linear(d, W*, b))).

    d: (..., in_size), W: (out_size, in_size), b: (out_size,) -> (..., out_size).
    Leading dims of d (e.g. timesteps) are flattened into the batch.
    matmul_dtype: MXU input dtype for the dense path (None = keep d.dtype).
    """
    *lead, in_size = d.shape
    out_size, in_size_w = W.shape
    assert in_size == in_size_w
    out_dtype = d.dtype

    d2 = d.reshape(-1, in_size)
    B = d2.shape[0]
    b8 = _round_up(max(B, 1), _SUB)
    budget, vmem_limit = _tpu_vmem_budget()

    if diag:
        assert in_size == out_size
        tb = _pick_diag_tile(b8, out_size, _itemsize(out_dtype),
                             _itemsize(out_dtype), block_batch, budget)
        d_p = d2 if b8 == B else jnp.pad(d2, ((0, b8 - B), (0, 0)))
        wd = jnp.diagonal(W).reshape(1, out_size)
        bv = b.reshape(1, out_size)

        out = pl.pallas_call(
            _td_diag_kernel,
            out_shape=jax.ShapeDtypeStruct((b8, out_size), out_dtype),
            grid=(_cdiv(b8, tb),),
            in_specs=[
                pl.BlockSpec((tb, out_size), lambda i: (i, 0)),
                pl.BlockSpec((1, out_size), lambda i: (0, 0)),
                pl.BlockSpec((1, out_size), lambda i: (0, 0)),
            ],
            out_specs=pl.BlockSpec((tb, out_size), lambda i: (i, 0)),
            compiler_params=pltpu.CompilerParams(
                dimension_semantics=("parallel",),
                vmem_limit_bytes=int(vmem_limit)),
        )(d_p, wd, bv)
        if b8 != B:
            out = out[:B]
        return out.reshape(*lead, out_size)

    # ---------------- dense path: MXU matmul, resident W^T ----------------
    mm_dtype = out_dtype if matmul_dtype is None else matmul_dtype
    out_p = _round_up(out_size, _LANE)              # lane-dense output / weight N dim
    tb, tn = _pick_dense_tiles(b8, in_size, out_p, _itemsize(mm_dtype),
                               _itemsize(out_dtype), block_batch, budget)

    # Cast before padding so pad passes move bf16, not f32, bytes.
    d_p = d2.astype(mm_dtype)
    if b8 != B:
        d_p = jnp.pad(d_p, ((0, b8 - B), (0, 0)))   # rows only; K is never padded
    wt = W.T.astype(mm_dtype)
    bv = b.reshape(1, out_size)
    if out_p != out_size:
        wt = jnp.pad(wt, ((0, 0), (0, out_p - out_size)))
        bv = jnp.pad(bv, ((0, 0), (0, out_p - out_size)))

    out = pl.pallas_call(
        _td_matmul_kernel,
        out_shape=jax.ShapeDtypeStruct((b8, out_p), out_dtype),
        grid=(_cdiv(out_p, tn), _cdiv(b8, tb)),     # batch innermost: W^T stays resident
        in_specs=[
            pl.BlockSpec((tb, in_size), lambda j, i: (i, 0)),    # batch tile, full K
            pl.BlockSpec((in_size, tn), lambda j, i: (0, j)),    # resident weight slab
            pl.BlockSpec((1, tn), lambda j, i: (0, j)),          # resident bias
        ],
        out_specs=pl.BlockSpec((tb, tn), lambda j, i: (i, j)),
        compiler_params=pltpu.CompilerParams(
            dimension_semantics=("parallel", "parallel"),
            vmem_limit_bytes=int(vmem_limit)),
    )(d_p, wt, bv)
    if b8 != B or out_p != out_size:
        out = out[:B, :out_size]                    # zero-copy return when aligned
    return out.reshape(*lead, out_size)


def temporal_decay_fused(d, Ws, bs, **kwargs):
    """Fuse several dense TemporalDecay layers that share the same input d
    (e.g. BRITS gamma_x and gamma_h): one pallas_call, one HBM read of d."""
    sizes = [int(w.shape[0]) for w in Ws]
    gamma = temporal_decay(d, jnp.concatenate(Ws, axis=0),
                           jnp.concatenate(bs, axis=0), diag=False, **kwargs)
    outs, off = [], 0
    for s in sizes:
        outs.append(gamma[..., off:off + s])
        off += s
    return outs


# ----------------------------- reference & test --------------------------------

def _reference(d, W, b, diag=False):
    Wm = W * jnp.eye(W.shape[0], dtype=W.dtype) if diag else W
    return jnp.exp(-jax.nn.relu(d @ Wm.T + b))


if __name__ == "__main__":
    key = jax.random.PRNGKey(0)
    ks = jax.random.split(key, 8)

    # Case 1: BRITS-typical square layer (hidden->hidden), dense + diag.
    batch, n = 8, 32
    stdv = 1.0 / math.sqrt(n)
    W = jax.random.uniform(ks[0], (n, n), minval=-stdv, maxval=stdv, dtype=jnp.float32)
    b = jax.random.uniform(ks[1], (n,), minval=-stdv, maxval=stdv, dtype=jnp.float32)
    d = jnp.abs(jax.random.normal(ks[2], (batch, n), dtype=jnp.float32))

    ref = _reference(d, W, b, diag=False)
    out_f32 = jax.block_until_ready(temporal_decay(d, W, b, diag=False, matmul_dtype=None))
    assert out_f32.shape == (batch, n)
    assert jnp.allclose(out_f32, ref, atol=1e-5, rtol=1e-5), "mismatch dense f32"

    out_bf16 = jax.block_until_ready(temporal_decay(d, W, b, diag=False))
    assert jnp.allclose(out_bf16, ref, atol=2e-2, rtol=2e-2), "mismatch dense bf16"

    out_dg = jax.block_until_ready(temporal_decay(d, W, b, diag=True))
    ref_dg = _reference(d, W, b, diag=True)
    assert out_dg.shape == (batch, n)
    assert jnp.allclose(out_dg, ref_dg, atol=1e-5, rtol=1e-5), "mismatch diag"

    # Case 2: ragged, non-square shapes + multiple (ragged) batch grid steps.
    B2, in2, out2 = 37, 20, 35
    stdv2 = 1.0 / math.sqrt(out2)
    W2 = jax.random.uniform(ks[3], (out2, in2), minval=-stdv2, maxval=stdv2, dtype=jnp.float32)
    b2 = jax.random.uniform(ks[4], (out2,), minval=-stdv2, maxval=stdv2, dtype=jnp.float32)
    d2 = jnp.abs(jax.random.normal(ks[5], (B2, in2), dtype=jnp.float32))

    out2_v = jax.block_until_ready(
        temporal_decay(d2, W2, b2, diag=False, block_batch=16, matmul_dtype=None))
    ref2 = _reference(d2, W2, b2, diag=False)
    assert out2_v.shape == (B2, out2)
    assert jnp.allclose(out2_v, ref2, atol=1e-5, rtol=1e-5), "mismatch ragged"

    # Case 3: two decay layers fused into a single pallas_call (shared d read).
    W3 = jax.random.uniform(ks[6], (64, in2), minval=-0.125, maxval=0.125, dtype=jnp.float32)
    b3 = jax.random.uniform(ks[7], (64,), minval=-0.125, maxval=0.125, dtype=jnp.float32)
    g2, g3 = temporal_decay_fused(d2, [W2, W3], [b2, b3])
    jax.block_until_ready((g2, g3))
    assert g2.shape == (B2, out2) and g3.shape == (B2, 64)
    assert jnp.allclose(g2, _reference(d2, W2, b2), atol=2e-2, rtol=2e-2), "mismatch fused[0]"
    assert jnp.allclose(g3, _reference(d2, W3, b3), atol=2e-2, rtol=2e-2), "mismatch fused[1]"

    print("KERNEL_OK")
</pallas_src>

<mosaic_0001>
module attributes {stable_mosaic.version = 11 : i64} {
  func.func @_td_matmul_kernel(%arg0: i32, %arg1: i32, %arg2: memref<8x32xf32, #tpu.memory_space<vmem>>, %arg3: memref<32x128xf32, #tpu.memory_space<vmem>>, %arg4: memref<1x128xf32, #tpu.memory_space<vmem>>, %arg5: memref<8x128xf32, #tpu.memory_space<vmem>>) attributes {dimension_semantics = [#tpu.dimension_semantics<parallel>, #tpu.dimension_semantics<parallel>], iteration_bounds = array<i64: 1, 1>, scalar_prefetch = 0 : i64, scratch_operands = 0 : i64, tpu.core_type = #tpu.core_type<tc>, window_params = [{transform_indices = @transform_0, window_bounds = array<i64: 8, 32>}, {transform_indices = @transform_1, window_bounds = array<i64: 32, 128>}, {transform_indices = @transform_2, window_bounds = array<i64: 1, 128>}, {transform_indices = @transform_3, window_bounds = array<i64: 8, 128>}]} {
    %c0 = arith.constant 0 : index
    %c0_0 = arith.constant 0 : index
    %0 = vector.load %arg2[%c0, %c0_0] : memref<8x32xf32, #tpu.memory_space<vmem>>, vector<8x32xf32>
    %c0_1 = arith.constant 0 : index
    %c0_2 = arith.constant 0 : index
    %1 = vector.load %arg3[%c0_1, %c0_2] : memref<32x128xf32, #tpu.memory_space<vmem>>, vector<32x128xf32>
    %cst = arith.constant dense<0.000000e+00> : vector<8x128xf32>
    %2 = tpu.matmul %0, %1, %cst {dimension_numbers = #tpu.dot_dimension_numbers<[1], [0], [0], [1], [0, 0, 1, 1], [], []>} : vector<8x32xf32>, vector<32x128xf32>, vector<8x128xf32> -> vector<8x128xf32>
    %c0_3 = arith.constant 0 : index
    %c0_4 = arith.constant 0 : index
    %3 = vector.load %arg4[%c0_3, %c0_4] : memref<1x128xf32, #tpu.memory_space<vmem>>, vector<1x128xf32>
    %4 = vector.broadcast %3 : vector<1x128xf32> to vector<8x128xf32>
    %5 = arith.addf %2, %4 : vector<8x128xf32>
    %cst_5 = arith.constant 0.000000e+00 : f32
    %6 = vector.broadcast %cst_5 : f32 to vector<8x128xf32>
    %7 = arith.maximumf %5, %6 : vector<8x128xf32>
    %cst_6 = arith.constant 0.000000e+00 : f32
    %8 = vector.broadcast %cst_6 : f32 to vector<8x128xf32>
    %9 = arith.subf %8, %7 : vector<8x128xf32>
    %10 = math.exp %9 : vector<8x128xf32>
    %c0_7 = arith.constant 0 : index
    %c0_8 = arith.constant 0 : index
    %11 = vector.load %arg5[%c0_7, %c0_8] : memref<8x128xf32, #tpu.memory_space<vmem>>, vector<8x128xf32>
    tpu.vector_store %arg5[%c0_7, %c0_8], %10 {strides = array<i32>} : memref<8x128xf32, #tpu.memory_space<vmem>>, vector<8x128xf32>,
    return
  }
  func.func @transform_0(%arg0: i32, %arg1: i32) -> (i32, i32) {
    %c0_i32 = arith.constant 0 : i32
    %c0_i32_0 = arith.constant 0 : i32
    return %arg1, %c0_i32 : i32, i32
  }
  func.func @transform_1(%arg0: i32, %arg1: i32) -> (i32, i32) {
    %c0_i32 = arith.constant 0 : i32
    %c0_i32_0 = arith.constant 0 : i32
    return %c0_i32, %arg0 : i32, i32
  }
  func.func @transform_2(%arg0: i32, %arg1: i32) -> (i32, i32) {
    %c0_i32 = arith.constant 0 : i32
    %c0_i32_0 = arith.constant 0 : i32
    return %c0_i32, %arg0 : i32, i32
  }
  func.func @transform_3(%arg0: i32, %arg1: i32) -> (i32, i32) {
    %c0_i32 = arith.constant 0 : i32
    return %arg1, %arg0 : i32, i32
  }
}

</mosaic_0001>

<bundles_post_ra>
// kernel: tpu_custom_call.1
= control target key start
LH: loop header
LB: loop body
LE: loop exit
PB: predicated region body
PF: predicated region fallthrough
CT: control target
= control target key end

     0   :  { %8 = vsyncpa [#allocation3], 0  ;;  %s328_s0 = inlined_call_operand.hbm [shape: f32[8,32], index: 0, kind: input, shape index: {}]   ;;  %s329_s1 = inlined_call_operand.hbm [shape: f32[32,128], index: 1, kind: input, shape index: {}]   ;;  %s330_s2 = inlined_call_operand.vmem [shape: f32[1,128], index: 2, kind: input, shape index: {}]   ;;  %s331_s3 = inlined_call_operand.hbm [shape: f32[8,128], index: 3, kind: output, shape index: {}]  }
   0x1   :  { %9 = vsyncpa [#allocation6], 0 }
   0x2   :  { %10 = vsyncpa [#allocation4], 0  ;;  %s254_s12 = smov [#allocation2]   ;;  %s255_s14 = smov [#allocation5]  }
   0x3   :  { %s17_s13 = sshll.u32 %s254_s12, 4  ;;  %s26_s15 = sshll.u32 %s255_s14, 4  ;;  %s18_s13 = int_to_ptr.vmem [resolvable:$true] %s17_s13  ;;  %s282_s15 = int_to_ptr.vmem [resolvable:$true] %s26_s15 }
   0x4   :  { %s182_s18 = scalar_lea.hbm %s328_s0, 128 }
   0x5   :  { %p183_p0 = scmp.ne.s32.totalorder %s328_s0, %s182_s18  ;;  %p186_p1 = scmp.lt.u32.totalorder %s182_s18, %s328_s0 }
   0x7   :  { %p188_p2 = pnand %p186_p1, %p183_p0 }
   0x9   :  { %191 = shalt.err (!%p188_p2)
}
   0xa   :  { %s192_s23 = scalar_lea.vmem %s18_s13, 128  ;;  %p197_p4 = scmp.lt.s32.totalorder %s18_s13, %s18_s13 }
   0xb   :  { %p193_p3 = scmp.ne.s32.totalorder %s18_s13, %s192_s23  ;;  %p198_p5 = scmp.lt.s32.totalorder %s192_s23, %s192_s23 }
   0xd   :  { %p199_p6 = por %p198_p5, %p197_p4 }
   0xf   :  { %p200_p7 = pnand %p199_p6, %p193_p3 }
  0x11   :  { %203 = shalt.err (!%p200_p7)
}
  0x12   :  { %20 = dma.hbm_to_vmem [thread:$0]  %s328_s0, 128, %s18_s13, [#allocation3]  }
  0x13   :  { %s204_s28 = scalar_lea.hbm %s329_s1, 512 }
  0x14   :  { %p205_p8 = scmp.ne.s32.totalorder %s329_s1, %s204_s28  ;;  %p208_p9 = scmp.lt.u32.totalorder %s204_s28, %s329_s1 }
  0x16   :  { %p210_p10 = pnand %p208_p9, %p205_p8 }
  0x18   :  { %213 = shalt.err (!%p210_p10)
}
  0x19   :  { %s214_s6 = scalar_lea.vmem %s282_s15, 512  ;;  %p219_p12 = scmp.lt.s32.totalorder %s282_s15, %s282_s15 }
  0x1a   :  { %p215_p11 = scmp.ne.s32.totalorder %s282_s15, %s214_s6  ;;  %p220_p13 = scmp.lt.s32.totalorder %s214_s6, %s214_s6 }
  0x1c   :  { %p221_p0 = por %p220_p13, %p219_p12 }
  0x1e   :  { %p222_p1 = pnand %p221_p0, %p215_p11 }
  0x20   :  { %225 = shalt.err (!%p222_p1)
}
  0x21   :  { %s256_s0 = smov 128   ;;  %s257_s7 = smov 8  }
  0x22   :  { %32 = dma.hbm_to_vmem [thread:$0]  %s329_s1, 512, %s282_s15, [#allocation6], %s256_s0, %s256_s0, %s257_s7  }
  0x23   :  { %248 = dma.done.wait [#allocation3], 128  }
  0x24   :  { %249 = vsyncadd [#allocation3], 4294967168 }
  0x25   :  { %250 = dma.done.wait [#allocation6], 512  }
  0x26   :  { %251 = vsyncadd [#allocation6], 4294966784  ;;  %v258_v0 = vmov 0.0|0.0   ;;  %vm259_vm0 = vmmov 0   ;;  %v260_v1 = vmov 0.0   ;;  %v42_v2 = vld [vmem:[#allocation5] sm:$0xff] }
  0x27   :  { %166 = vmatprep.subr.bf16.mxu0 %v258_v0  ;;  %163 = vmatprep.mubr.msk.f32.mxu0 %vm259_vm0, %v260_v1  ;;  %v43_v3 = vld [vmem:[#allocation5 + $0x8] sm:$0xff]  ;;  %v44_v4 = vld [vmem:[#allocation5 + $0x10] sm:$0xff]  ;;  %v45_v6 = vld [vmem:[#allocation5 + $0x18] sm:$0xff]  ;;  %vm53_vm1 = vcmask 261120   ;;  %s261_s11 = smov [#allocation7]  }
  0x28   :  { %v167_v5 = vpack.c.bf16 %v43_v3, %v42_v2  ;;  %v170_v7 = vpack.c.bf16 %v45_v6, %v44_v4  ;;  %v41_v8 = vld [vmem:[#allocation2] sm:$0xff]  ;;  %s138_s12 = sshll.u32 %s261_s11, 4  ;;  %s139_s12 = int_to_ptr.vmem [resolvable:$true] %s138_s12 }
  0x29   :  { %v148_v9 = vld [vmem:[%s330_s2] ss:$0 sm:$0xff]  ;;  %s226_s13 = scalar_lea.vmem %s139_s12, 128  ;;  %p231_p3 = scmp.lt.s32.totalorder %s139_s12, %s139_s12 }
  0x2a   :  { %168 = vmatpush3.bf16.msra.mxu0 %v167_v5  ;;  %p227_p2 = scmp.ne.s32.totalorder %s139_s12, %s226_s13  ;;  %p232_p4 = scmp.lt.s32.totalorder %s226_s13, %s226_s13 }
  0x2b   :  { %169 = vmatprep.subr.bf16.mxu0 %v258_v0 }
  0x2c   :  { %p233_p5 = por %p232_p4, %p231_p3 }
  0x2e   :  { %171 = vmatpush3.bf16.msra.mxu0 %v170_v7  ;;  %p234_p6 = pnand %p233_p5, %p227_p2 }
  0x31   :  { %164 = vmatmul.mubr.msk.f32.vlgmr.msra.gmra.mrb[0].mxu0 %vm53_vm1, %v41_v8 }
 0x104   :  { %v123_v10 = vpop.f32.mrb[0].mxu0 }
 0x105   :  { %v124_v11 = vadd.f32 %v148_v9, %v123_v10  ;;  %v165_v12 = vpop.f32.mrb[1].mxu0 }
 0x107   :  { %v127_v13 = vmax.f32 %v124_v11, 0.0 }
 0x109   :  { %v128_v14 = vsub.f32 0.0, %v127_v13 }
 0x10b   :  { %v129_v15 = vmul.f32 1.442695, %v128_v14 }
 0x10d   :  { %180 = vpow2.f32 %v129_v15 }
 0x117   :  { %v181_v16 = vpop.eup %180 }
 0x118   :  { %131 = vst [vmem:[#allocation7] sm:$0xff] %v181_v16 }
 0x119   :  { %237 = shalt.err (!%p234_p6)
}
 0x11a   :  { %s238_s15 = scalar_lea.hbm %s331_s3, 128 }
 0x11b   :  { %p239_p7 = scmp.ne.s32.totalorder %s331_s3, %s238_s15  ;;  %p242_p8 = scmp.lt.u32.totalorder %s238_s15, %s331_s3 }
 0x11d   :  { %p244_p9 = pnand %p242_p8, %p239_p7 }
 0x11f   :  { %247 = shalt.err (!%p244_p9)
}
 0x120   :  { %141 = dma.vmem_to_hbm [thread:$0]  %s139_s12, 128, %s331_s3, [#allocation4]  }
 0x121   :  { %252 = dma.done.wait [#allocation4], 128  }
 0x122   :  { %253 = vsyncadd [#allocation4], 4294967168 }
 0x123   :  { %145 = vsyncpa [#allocation3], 1 }
 0x124   :  { %146 = vsyncpa [#allocation6], 1 }
 0x125   :  { %147 = vsyncpa [#allocation4], 1 }

</bundles_post_ra>
